<compile_context>
chip_gen: v6e
topology: v6e:2x2x1
jax: 0.10.0
libtpu: 0.0.40
codegen_flags: <defaults>
</compile_context>

<pallas_src>
import jax
import jax.numpy as jnp
from jax.experimental import pallas as pl
from jax.experimental.pallas import tpu as pltpu


def _round_up(x, m):
    return ((x + m - 1) // m) * m


def _patch_embed_kernel(x_ref, w_ref, b_ref, o_ref):
    # x_ref: (TILE_M, K) patch-matrix tile
    # w_ref: (K, E_pad) projection weight (resident across the grid)
    # b_ref: (1, E_pad) f32 bias (resident across the grid)
    acc = jnp.dot(x_ref[...], w_ref[...], preferred_element_type=jnp.float32)
    o_ref[...] = (acc + b_ref[...]).astype(o_ref.dtype)


def patch_embed(x, weight, bias, patch_size, *, compute_dtype=jnp.bfloat16,
                tile_m=1024):
    """Swin PatchEmbed forward.

    x: (B, C, H, W) NCHW image.  weight: (E, C, p, p) PyTorch Conv2d weight.
    bias: (E,).  Returns (B, Ho*Wo, E) in `compute_dtype`.
    """
    B, C, H, W = x.shape
    p = patch_size
    Ho, Wo = H // p, W // p
    E = weight.shape[0]
    M = B * Ho * Wo
    K = C * p * p

    # Lane-dense output: pad embed dim up to a multiple of 128 so output stores
    # are full (unmasked) vst's and MXU columns are filled.  K is left unpadded
    # (the input block takes the full K extent, so no tiling-rule issue, and
    # padding K would only inflate input HBM traffic).
    E_pad = _round_up(E, 128)

    # im2col: (B,C,Ho,p,Wo,p) -> (B,Ho,Wo,C,p,p) -> (M, K); inner order (c,kh,kw)
    # matches the Conv2d weight reshape below.
    # TODO(synk): fuse the patch extraction into the kernel (row-band DMA over
    # the NCHW array + on-chip rearrange) to avoid materializing the (M, K)
    # copy in HBM for this memory-bound op.
    xp = (
        x.reshape(B, C, Ho, p, Wo, p)
        .transpose(0, 2, 4, 1, 3, 5)
        .reshape(M, K)
        .astype(compute_dtype)
    )
    wt = weight.reshape(E, K).T.astype(compute_dtype)                   # (K, E)
    wt = jnp.pad(wt, ((0, 0), (0, E_pad - E)))                          # zero cols
    b2d = jnp.pad(bias.astype(jnp.float32).reshape(1, E),
                  ((0, 0), (0, E_pad - E)))                             # (1, E_pad)

    # Tile the M axis; 16-row multiples satisfy both f32 (8) and bf16 (16)
    # sublane tiling.  Cap at M (rounded up) for small inputs.
    tm = max(16, min(tile_m, _round_up(M, 16)))
    grid = (pl.cdiv(M, tm),)

    out = pl.pallas_call(
        _patch_embed_kernel,
        out_shape=jax.ShapeDtypeStruct((M, E_pad), compute_dtype),
        grid=grid,
        in_specs=[
            pl.BlockSpec((tm, K), lambda i: (i, 0)),       # patch rows: tiled over M
            pl.BlockSpec((K, E_pad), lambda i: (0, 0)),    # weight: same block every step
            pl.BlockSpec((1, E_pad), lambda i: (0, 0)),    # bias: same block every step
        ],
        out_specs=pl.BlockSpec((tm, E_pad), lambda i: (i, 0)),
        compiler_params=pltpu.CompilerParams(
            dimension_semantics=("parallel",),             # shard M across TCs (v7x)
        ),
    )(xp, wt, b2d)

    # Drop padded embedding columns, reshape to (B, num_patches, E)
    # (== Conv2d(...).flatten(2).transpose(1, 2)).
    return out[:, :E].reshape(B, Ho * Wo, E)


if __name__ == "__main__":
    # Small shapes consistent with the module (img_size=16, patch_size=4,
    # in_chans=4, embed_dim=32, batch=2).
    B, C, H, W = 2, 4, 16, 16
    patch_size = 4
    embed_dim = 32

    key = jax.random.PRNGKey(0)
    kx, kw, kb = jax.random.split(key, 3)
    x = jax.random.normal(kx, (B, C, H, W), dtype=jnp.float32)
    weight = jax.random.normal(
        kw, (embed_dim, C, patch_size, patch_size), dtype=jnp.float32
    ) * 0.05
    bias = jax.random.normal(kb, (embed_dim,), dtype=jnp.float32) * 0.05

    # Pure-JAX reference (strided conv == patch matmul).
    Ho, Wo = H // patch_size, W // patch_size
    xp_ref = (
        x.reshape(B, C, Ho, patch_size, Wo, patch_size)
        .transpose(0, 2, 4, 1, 3, 5)
        .reshape(B * Ho * Wo, C * patch_size * patch_size)
    )
    ref = (
        jnp.dot(xp_ref, weight.reshape(embed_dim, -1).T,
                precision=jax.lax.Precision.HIGHEST)
        + bias
    ).reshape(B, Ho * Wo, embed_dim)

    # f32 compute path: tight check.
    out_f32 = jax.block_until_ready(
        patch_embed(x, weight, bias, patch_size, compute_dtype=jnp.float32)
    )
    assert out_f32.shape == (B, Ho * Wo, embed_dim)
    assert jnp.allclose(out_f32, ref, atol=2e-3, rtol=2e-3)

    # bf16 compute path (performance default): halves HBM traffic, native MXU dtype.
    out_bf16 = jax.block_until_ready(patch_embed(x, weight, bias, patch_size))
    assert out_bf16.shape == (B, Ho * Wo, embed_dim)
    assert jnp.allclose(out_bf16.astype(jnp.float32), ref, atol=5e-2, rtol=5e-2)

    print("KERNEL_OK")
</pallas_src>

<mosaic_0001>
module attributes {stable_mosaic.version = 11 : i64} {
  func.func @_patch_embed_kernel(%arg0: i32, %arg1: memref<32x64xf32, #tpu.memory_space<vmem>>, %arg2: memref<64x128xf32, #tpu.memory_space<vmem>>, %arg3: memref<1x128xf32, #tpu.memory_space<vmem>>, %arg4: memref<32x128xf32, #tpu.memory_space<vmem>>) attributes {dimension_semantics = [#tpu.dimension_semantics<parallel>], iteration_bounds = array<i64: 1>, scalar_prefetch = 0 : i64, scratch_operands = 0 : i64, tpu.core_type = #tpu.core_type<tc>, window_params = [{transform_indices = @transform_0, window_bounds = array<i64: 32, 64>}, {pipeline_mode = #tpu.pipeline_mode<synchronous>, transform_indices = @transform_1, window_bounds = array<i64: 64, 128>}, {pipeline_mode = #tpu.pipeline_mode<synchronous>, transform_indices = @transform_2, window_bounds = array<i64: 1, 128>}, {transform_indices = @transform_3, window_bounds = array<i64: 32, 128>}]} {
    %c0 = arith.constant 0 : index
    %c0_0 = arith.constant 0 : index
    %0 = vector.load %arg1[%c0, %c0_0] : memref<32x64xf32, #tpu.memory_space<vmem>>, vector<32x64xf32>
    %c0_1 = arith.constant 0 : index
    %c0_2 = arith.constant 0 : index
    %1 = vector.load %arg2[%c0_1, %c0_2] : memref<64x128xf32, #tpu.memory_space<vmem>>, vector<64x128xf32>
    %cst = arith.constant dense<0.000000e+00> : vector<32x128xf32>
    %2 = tpu.matmul %0, %1, %cst {dimension_numbers = #tpu.dot_dimension_numbers<[1], [0], [0], [1], [0, 0, 1, 1], [], []>} : vector<32x64xf32>, vector<64x128xf32>, vector<32x128xf32> -> vector<32x128xf32>
    %c0_3 = arith.constant 0 : index
    %c0_4 = arith.constant 0 : index
    %3 = vector.load %arg3[%c0_3, %c0_4] : memref<1x128xf32, #tpu.memory_space<vmem>>, vector<1x128xf32>
    %4 = vector.broadcast %3 : vector<1x128xf32> to vector<32x128xf32>
    %5 = arith.addf %2, %4 : vector<32x128xf32>
    %c0_5 = arith.constant 0 : index
    %c0_6 = arith.constant 0 : index
    %6 = vector.load %arg4[%c0_5, %c0_6] : memref<32x128xf32, #tpu.memory_space<vmem>>, vector<32x128xf32>
    tpu.vector_store %arg4[%c0_5, %c0_6], %5 {strides = array<i32>} : memref<32x128xf32, #tpu.memory_space<vmem>>, vector<32x128xf32>,
    return
  }
  func.func @transform_0(%arg0: i32) -> (i32, i32) {
    %c0_i32 = arith.constant 0 : i32
    %c0_i32_0 = arith.constant 0 : i32
    return %arg0, %c0_i32 : i32, i32
  }
  func.func @transform_1(%arg0: i32) -> (i32, i32) {
    %c0_i32 = arith.constant 0 : i32
    %c0_i32_0 = arith.constant 0 : i32
    %c0_i32_1 = arith.constant 0 : i32
    return %c0_i32, %c0_i32_0 : i32, i32
  }
  func.func @transform_2(%arg0: i32) -> (i32, i32) {
    %c0_i32 = arith.constant 0 : i32
    %c0_i32_0 = arith.constant 0 : i32
    %c0_i32_1 = arith.constant 0 : i32
    return %c0_i32, %c0_i32_0 : i32, i32
  }
  func.func @transform_3(%arg0: i32) -> (i32, i32) {
    %c0_i32 = arith.constant 0 : i32
    %c0_i32_0 = arith.constant 0 : i32
    return %arg0, %c0_i32 : i32, i32
  }
}

</mosaic_0001>

<bundles_post_ra>
// kernel: tpu_custom_call.1
= control target key start
LH: loop header
LB: loop body
LE: loop exit
PB: predicated region body
PF: predicated region fallthrough
CT: control target
= control target key end

     0   :  { %8 = vsyncpa [#allocation3], 0  ;;  %s354_s0 = inlined_call_operand.hbm [shape: f32[32,64], index: 0, kind: input, shape index: {}]   ;;  %s355_s1 = inlined_call_operand.hbm [shape: f32[64,128], index: 1, kind: input, shape index: {}]   ;;  %s356_s2 = inlined_call_operand.vmem [shape: f32[1,128], index: 2, kind: input, shape index: {}]   ;;  %s357_s3 = inlined_call_operand.hbm [shape: f32[32,128], index: 3, kind: output, shape index: {}]  }
   0x1   :  { %9 = vsyncpa [#allocation6], 0 }
   0x2   :  { %10 = vsyncpa [#allocation4], 0  ;;  %s308_s12 = smov [#allocation2]  }
   0x3   :  { %s16_s13 = sshll.u32 %s308_s12, 4  ;;  %s17_s13 = int_to_ptr.vmem [resolvable:$true] %s16_s13 }
   0x4   :  { %s250_s14 = scalar_lea.vmem %s17_s13, 512  ;;  %p255_p1 = scmp.lt.s32.totalorder %s17_s13, %s17_s13 }
   0x5   :  { %p251_p0 = scmp.ne.s32.totalorder %s17_s13, %s250_s14  ;;  %p256_p2 = scmp.lt.s32.totalorder %s250_s14, %s250_s14 }
   0x7   :  { %p257_p3 = por %p256_p2, %p255_p1 }
   0x9   :  { %p258_p4 = pnand %p257_p3, %p251_p0 }
   0xb   :  { %261 = shalt.err (!%p258_p4)
}
   0xc   :  { %s309_s15 = smov 128   ;;  %s310_s16 = smov 8  }
   0xd   :  { %22 = dma.hbm_to_vmem [thread:$0]  %s354_s0, 512, %s17_s13, [#allocation3], %s309_s15, %s309_s15, %s310_s16  }
   0xe   :  { %s311_s19 = smov [#allocation5]  }
   0xf   :  { %s28_s20 = sshll.u32 %s311_s19, 4  ;;  %s29_s20 = int_to_ptr.vmem [resolvable:$true] %s28_s20 }
  0x10   :  { %s270_s21 = scalar_lea.vmem %s29_s20, 1024  ;;  %p275_p6 = scmp.lt.s32.totalorder %s29_s20, %s29_s20 }
  0x11   :  { %p271_p5 = scmp.ne.s32.totalorder %s29_s20, %s270_s21  ;;  %p276_p7 = scmp.lt.s32.totalorder %s270_s21, %s270_s21 }
  0x13   :  { %p277_p8 = por %p276_p7, %p275_p6 }
  0x15   :  { %p278_p9 = pnand %p277_p8, %p271_p5 }
  0x17   :  { %281 = shalt.err (!%p278_p9)
}
  0x18   :  { %34 = dma.hbm_to_vmem [thread:$0]  %s355_s1, 1024, %s29_s20, [#allocation6], %s309_s15, %s309_s15, %s310_s16  }
  0x19   :  { %302 = dma.done.wait [#allocation3], 512  }
  0x1a   :  { %303 = vsyncadd [#allocation3], 4294966784 }
  0x1b   :  { %304 = dma.done.wait [#allocation6], 1024  }
  0x1c   :  { %305 = vsyncadd [#allocation6], 4294966272  ;;  %v54_v0 = vld [vmem:[#allocation5 + $0x38] sm:$0xff]  ;;  %v53_v1 = vld [vmem:[#allocation5 + $0x30] sm:$0xff]  ;;  %vm62_vm0 = vcmask 523264   ;;  %s312_s24 = smov [#allocation7]  }
  0x1d   :  { %199 = vmatprep.subr.mxu0 %v54_v0  ;;  %221 = vmatprep.subr.mxu1 %v54_v0  ;;  %v52_v2 = vld [vmem:[#allocation5 + $0x28] sm:$0xff]  ;;  %v51_v3 = vld [vmem:[#allocation5 + $0x20] sm:$0xff]  ;;  %v50_v4 = vld [vmem:[#allocation5 + $0x18] sm:$0xff]  ;;  %s169_s25 = sshll.u32 %s312_s24, 4  ;;  %s170_s25 = int_to_ptr.vmem [resolvable:$true] %s169_s25 }
  0x1e   :  { %200 = vmatpush3.msra.mxu0 %v54_v0  ;;  %229 = vmatpush3.msra.mxu1 %v54_v0  ;;  %v49_v5 = vld [vmem:[#allocation5 + $0x10] sm:$0xff]  ;;  %v48_v6 = vld [vmem:[#allocation5 + $0x8] sm:$0xff]  ;;  %v47_v7 = vld [vmem:[#allocation5] sm:$0xff]  ;;  %s282_s26 = scalar_lea.vmem %s170_s25, 512  ;;  %p287_p11 = scmp.lt.s32.totalorder %s170_s25, %s170_s25 }
  0x1f   :  { %201 = vmatprep.subr.mxu0 %v53_v1  ;;  %222 = vmatprep.subr.mxu1 %v53_v1  ;;  %v43_v8 = vld [vmem:[#allocation2] sm:$0xff]  ;;  %v45_v9 = vld [vmem:[#allocation2 + $0x10] sm:$0xff]  ;;  %v44_v10 = vld [vmem:[#allocation2 + $0x8] sm:$0xff]  ;;  %p283_p10 = scmp.ne.s32.totalorder %s170_s25, %s282_s26  ;;  %p288_p12 = scmp.lt.s32.totalorder %s282_s26, %s282_s26 }
  0x20   :  { %202 = vmatpush3.msra.mxu0 %v53_v1  ;;  %230 = vmatpush3.msra.mxu1 %v53_v1  ;;  %v46_v11 = vld [vmem:[#allocation2 + $0x18] sm:$0xff]  ;;  %v182_v12 = vld [vmem:[%s356_s2] ss:$0 sm:$0xff] }
  0x21   :  { %203 = vmatprep.subr.mxu0 %v52_v2  ;;  %223 = vmatprep.subr.mxu1 %v52_v2  ;;  %p289_p13 = por %p288_p12, %p287_p11 }
  0x22   :  { %204 = vmatpush3.msra.mxu0 %v52_v2  ;;  %231 = vmatpush3.msra.mxu1 %v52_v2 }
  0x23   :  { %205 = vmatprep.subr.mxu0 %v51_v3  ;;  %224 = vmatprep.subr.mxu1 %v51_v3  ;;  %p290_p0 = pnand %p289_p13, %p283_p10 }
  0x24   :  { %206 = vmatpush3.msra.mxu0 %v51_v3  ;;  %232 = vmatpush3.msra.mxu1 %v51_v3 }
  0x25   :  { %207 = vmatprep.subr.mxu0 %v50_v4  ;;  %225 = vmatprep.subr.mxu1 %v50_v4 }
  0x26   :  { %208 = vmatpush3.msra.mxu0 %v50_v4  ;;  %233 = vmatpush3.msra.mxu1 %v50_v4 }
  0x27   :  { %209 = vmatprep.subr.mxu0 %v49_v5  ;;  %226 = vmatprep.subr.mxu1 %v49_v5 }
  0x28   :  { %210 = vmatpush3.msra.mxu0 %v49_v5  ;;  %234 = vmatpush3.msra.mxu1 %v49_v5 }
  0x29   :  { %211 = vmatprep.subr.mxu0 %v48_v6  ;;  %227 = vmatprep.subr.mxu1 %v48_v6 }
  0x2a   :  { %212 = vmatpush3.msra.mxu0 %v48_v6  ;;  %235 = vmatpush3.msra.mxu1 %v48_v6 }
  0x2b   :  { %213 = vmatprep.subr.mxu0 %v47_v7  ;;  %228 = vmatprep.subr.mxu1 %v47_v7 }
  0x2c   :  { %214 = vmatpush3.msra.mxu0 %v47_v7  ;;  %236 = vmatpush3.msra.mxu1 %v47_v7 }
  0x2d   :  { %215 = vmatprep.mubr.msk.f32.mxu0 %vm62_vm0, %v43_v8  ;;  %218 = vmatprep.mubr.msk.f32.mxu1 %vm62_vm0, %v45_v9 }
  0x2e   :  { %216 = vmatmul.mubr.msk.f32.vlgmr.msra.gmra.mxu0 %vm62_vm0, %v44_v10  ;;  %219 = vmatmul.mubr.msk.f32.vlgmr.msra.gmra.mxu1 %vm62_vm0, %v46_v11 }
  0xee   :  { %v217_v13 = vpop.f32.mrf.mxu0  ;;  %v220_v14 = vpop.f32.mrf.mxu1 }
  0xef   :  { %v147_v15 = vadd.f32 %v217_v13, %v182_v12  ;;  %v157_v16 = vadd.f32 %v220_v14, %v182_v12 }
  0xf0   :  { %v141_v17 = vpop.f32.mrf.mxu0  ;;  %v151_v18 = vpop.f32.mrf.mxu1 }
  0xf1   :  { %161 = vst [vmem:[#allocation7 + $0x8] sm:$0xff] %v147_v15  ;;  %163 = vst [vmem:[#allocation7 + $0x18] sm:$0xff] %v157_v16  ;;  %v142_v19 = vadd.f32 %v182_v12, %v141_v17  ;;  %v152_v20 = vadd.f32 %v182_v12, %v151_v18 }
  0xf3   :  { %160 = vst [vmem:[#allocation7] sm:$0xff] %v142_v19  ;;  %162 = vst [vmem:[#allocation7 + $0x10] sm:$0xff] %v152_v20 }
  0xf4   :  { %293 = shalt.err (!%p290_p0)
}
  0xf5   :  { %175 = dma.vmem_to_hbm [thread:$0]  %s170_s25, 512, %s357_s3, [#allocation4], %s309_s15, %s309_s15, %s310_s16  }
  0xf6   :  { %306 = dma.done.wait [#allocation4], 512  }
  0xf7   :  { %307 = vsyncadd [#allocation4], 4294966784 }
  0xf8   :  { %179 = vsyncpa [#allocation3], 1 }
  0xf9   :  { %180 = vsyncpa [#allocation6], 1 }
  0xfa   :  { %181 = vsyncpa [#allocation4], 1 }

</bundles_post_ra>
